<compile_context>
chip_gen: v7x
topology: tpu7x:2x2x1
jax: 0.10.0
libtpu: 0.0.40
codegen_flags: <defaults>
</compile_context>

<pallas_src>
import functools

import numpy as np
import jax
import jax.numpy as jnp
from jax.experimental import pallas as pl
from jax.experimental.pallas import tpu as pltpu

# ----------------------------- model hyper-params ---------------------------
IN_CH = 3
FEAT_SIZE = 32          # feat_size (channels out of the backbone stand-in)
NUM_CLASSES = 2
HIDDEN_W = 16           # hidden width of the synthetic WeightNet MLP
KSIZE, STRIDE, PAD = 3, 2, 1
SPATIAL_IN = 12         # 12x12 input -> conv(3, s=2, p=1) -> 6x6 ("alexnet" fc1=Linear(36,1))
FMAP = 6                # output feature-map side
P_SPATIAL = FMAP * FMAP
PATCH_K = IN_CH * KSIZE * KSIZE        # 27
GROUP_SIZE = 4          # 'rot90' group
LANES = 128             # lane-dense logits/weight slab width
HEAD_LANES = LANES + HIDDEN_W          # fused fc2 + WeightNet-layer-1 RHS width (144)
TILE_BATCH = 2          # samples per grid step; TILE_BATCH*GROUP_SIZE must be a multiple of 8


# ------------------------------- fused Pallas kernel ------------------------
def _equi0_fused_kernel(cols_ref, convw_ref, sel_ref, headw_ref, consts_ref, out_ref, *,
                        ts, tb):
    """One batch tile: conv+ReLU, fc1/sum-pool, fc2 + WeightNet, group softmax.

    cols_ref : (ts*36, 27) bf16   im2col patches, rows ordered (g, b_local, spatial)
    out_ref  : (ts, 128)   f32    lanes 0..1 logits, lane 2 softmaxed group weight
    """
    conv_b = consts_ref[0:1, 0:FEAT_SIZE]       # (1, 32)
    zbias = consts_ref[1:2, :]                  # (1, 144): [fc2_b + folded fc1_b | 0 | wn_b1]
    wn_w2 = consts_ref[2:3, 0:HIDDEN_W]         # (1, 16)
    wn_b2 = consts_ref[3:4, 0:1]                # (1, 1)
    onehot = consts_ref[4:5, 0:LANES]           # (1, 128): 1.0 at lane NUM_CLASSES

    # conv3x3/s2/p1 stand-in as im2col matmul: bf16 operands, f32 MXU accumulation.
    feat = jnp.dot(cols_ref[...], convw_ref[...], preferred_element_type=jnp.float32)
    feat = jnp.maximum(feat + conv_b, 0.0)                              # (ts*36, 32) f32

    # fc1 spatial reduction (rows 0..ts-1) + spatial sum-pool (rows ts..2ts-1) in one
    # constant-size selection matmul (batch independent).
    y = jnp.dot(sel_ref[...], feat.astype(jnp.bfloat16),
                preferred_element_type=jnp.float32)                     # (2*ts, 32)

    # fused head: lanes 0..127 = fc2 logits slab (fc1/fc2 biases folded into zbias),
    # lanes 128..143 = WeightNet layer-1 pre-activation.
    z = jnp.dot(y.astype(jnp.bfloat16), headw_ref[...],
                preferred_element_type=jnp.float32) + zbias             # (2*ts, 144)

    slab = z[0:ts, 0:LANES]                                             # (ts, 128) logits
    h = jnp.maximum(z[ts:, LANES:], 0.0)                                # (ts, 16)
    # WeightNet layer 2: VPU multiply + XLU lane reduce (avoids an N=1 MXU push).
    wraw = jnp.sum(h * wn_w2, axis=-1, keepdims=True) + wn_b2           # (ts, 1)

    # group softmax: rows of the same batch element sit at stride tb (G=4 members).
    # log-step cyclic shift-and-reduce on the sublane axis (XLU; per-group max for safety).
    m = jnp.maximum(wraw, pltpu.roll(wraw, shift=tb, axis=0))
    m = jnp.maximum(m, pltpu.roll(m, shift=2 * tb, axis=0))
    e = jnp.exp(wraw - m)
    s = e + pltpu.roll(e, shift=tb, axis=0)
    s = s + pltpu.roll(s, shift=2 * tb, axis=0)
    wts = e * pl.reciprocal(s, approx=True)                             # (ts, 1)

    # lane-dense packed output: logits already in lanes 0..1; weight goes to lane 2.
    out_ref[...] = slab + wts * onehot


def _fused_forward_call(cols, pk, num_tiles, ts):
    kern = functools.partial(_equi0_fused_kernel, ts=ts, tb=ts // GROUP_SIZE)
    return pl.pallas_call(
        kern,
        out_shape=jax.ShapeDtypeStruct((num_tiles * ts, LANES), jnp.float32),
        grid=(num_tiles,),
        in_specs=[
            pl.BlockSpec((ts * P_SPATIAL, PATCH_K), lambda t: (t, 0)),   # cols tile (pipelined)
            pl.BlockSpec(pk['conv_w'].shape, lambda t: (0, 0)),          # constants: fetched once
            pl.BlockSpec(pk['sel'].shape, lambda t: (0, 0)),
            pl.BlockSpec(pk['head_w'].shape, lambda t: (0, 0)),
            pl.BlockSpec(pk['consts'].shape, lambda t: (0, 0)),
        ],
        out_specs=pl.BlockSpec((ts, LANES), lambda t: (t, 0)),
        compiler_params=pltpu.CompilerParams(dimension_semantics=("parallel",)),
    )(cols, pk['conv_w'], pk['sel'], pk['head_w'], pk['consts'])


# ------------------------------- JAX glue ------------------------------------
def build_patch_index():
    """Static index map fusing rot90 (k=0..3) + im2col(3x3, s=2, p=1): (G, 36, 27), -1 = pad."""
    pos = np.arange(IN_CH * SPATIAL_IN * SPATIAL_IN, dtype=np.int32).reshape(
        IN_CH, SPATIAL_IN, SPATIAL_IN)
    oy, ox = np.meshgrid(np.arange(FMAP), np.arange(FMAP), indexing="ij")
    ky, kx = np.meshgrid(np.arange(KSIZE), np.arange(KSIZE), indexing="ij")
    iy = (oy * STRIDE - PAD).reshape(P_SPATIAL, 1, 1, 1) + ky.reshape(1, 1, KSIZE, KSIZE)
    ix = (ox * STRIDE - PAD).reshape(P_SPATIAL, 1, 1, 1) + kx.reshape(1, 1, KSIZE, KSIZE)
    valid = (iy >= 0) & (iy < SPATIAL_IN) & (ix >= 0) & (ix < SPATIAL_IN)
    iyc = np.clip(iy, 0, SPATIAL_IN - 1)
    ixc = np.clip(ix, 0, SPATIAL_IN - 1)
    pidx = np.full((GROUP_SIZE, P_SPATIAL, IN_CH, KSIZE, KSIZE), -1, dtype=np.int32)
    cix = np.arange(IN_CH).reshape(1, IN_CH, 1, 1)
    for g in range(GROUP_SIZE):
        pg = np.rot90(pos, k=g, axes=(1, 2))
        pidx[g] = np.where(valid, pg[cix, iyc, ixc], -1)       # patch-channel order (c, ky, kx)
    return pidx.reshape(GROUP_SIZE, P_SPATIAL, PATCH_K)


@jax.jit
def equi0cnn_forward(packed, x):
    """x: (B, C, H, W) NCHW.  Returns (logits (G*B, num_classes), weights (G*B, 1))."""
    b = x.shape[0]
    assert b % TILE_BATCH == 0
    t = b // TILE_BATCH
    ts = GROUP_SIZE * TILE_BATCH

    # group_transformed_input + im2col fused into ONE gather: x is read once, no rotated
    # copies materialized.  Rows come out already in per-tile (g, b_local, spatial) order.
    x_flat = x.reshape(b, -1)
    b_idx = jnp.arange(b, dtype=jnp.int32).reshape(t, 1, TILE_BATCH, 1, 1)
    safe = packed['pidx_safe'][None, :, None, :, :]            # (1, G, 1, 36, 27)
    valid = packed['pidx_valid'][None, :, None, :, :]
    cols = jnp.where(valid, x_flat[b_idx, safe], 0.0)          # (T, G, TB, 36, 27)
    cols = cols.reshape(t * ts * P_SPATIAL, PATCH_K).astype(jnp.bfloat16)

    slab = _fused_forward_call(cols, packed, t, ts)            # (T*ts, 128), rows (t, g, b_local)

    # tiny relayout to the module's global (group, batch) row order
    slab = slab.reshape(t, GROUP_SIZE, TILE_BATCH, LANES).transpose(1, 0, 2, 3)
    slab = slab.reshape(GROUP_SIZE * b, LANES)
    logits = slab[:, :NUM_CLASSES]
    weights = slab[:, NUM_CLASSES:NUM_CLASSES + 1]
    # use_e_loss=True -> forward returns the (x, weights) tuple from get_equi0output
    return logits, weights


def init_params(key):
    ks = jax.random.split(key, 8)
    p = {}
    # TODO(synk): pre_model (pretrained alexnet features) is external; replaced by a
    # deterministic conv3x3/s2/p1 + ReLU stand-in producing (FEAT_SIZE, 6, 6) maps.
    p['conv_w_flat'] = 0.1 * jax.random.normal(ks[0], (PATCH_K, FEAT_SIZE), jnp.float32)
    p['conv_b'] = 0.1 * jax.random.normal(ks[1], (FEAT_SIZE,), jnp.float32)
    # fc1 = Linear(6*6, 1)
    p['fc1_w'] = 0.1 * jax.random.normal(ks[2], (P_SPATIAL,), jnp.float32)
    p['fc1_b'] = 0.1 * jax.random.normal(ks[3], (1,), jnp.float32)
    # fc2 = Linear(feat_size, num_classes)   (PyTorch weight layout: (out, in))
    p['fc2_w'] = 0.1 * jax.random.normal(ks[4], (NUM_CLASSES, FEAT_SIZE), jnp.float32)
    p['fc2_b'] = 0.1 * jax.random.normal(ks[5], (NUM_CLASSES,), jnp.float32)
    # TODO(synk): WeightNet internals are not given in the source; synthetic stand-in =
    # spatial sum-pool + 2-layer MLP -> 1 scalar weight per (group, batch) row.
    p['wn_w1'] = 0.05 * jax.random.normal(ks[6], (FEAT_SIZE, HIDDEN_W), jnp.float32)
    p['wn_b1'] = jnp.zeros((HIDDEN_W,), jnp.float32)
    p['wn_w2'] = 0.05 * jax.random.normal(ks[7], (HIDDEN_W, 1), jnp.float32)
    p['wn_b2'] = jnp.zeros((1,), jnp.float32)
    return p


def pack_params(params, tile_batch=TILE_BATCH):
    """One-time, batch-independent packing into kernel-friendly, bf16/lane-dense layouts."""
    ts = GROUP_SIZE * tile_batch
    assert ts % 8 == 0, "tile rows must be sublane aligned (use an even TILE_BATCH)"

    # per-tile selection matmul: rows 0..ts-1 = per-sample fc1 spatial weights,
    # rows ts..2ts-1 = per-sample spatial sum-pool (WeightNet input).  O(tile), not O(B).
    eye_ts = jnp.eye(ts, dtype=jnp.float32)
    sel = jnp.concatenate(
        [jnp.kron(eye_ts, params['fc1_w'].reshape(1, P_SPATIAL)),
         jnp.kron(eye_ts, jnp.ones((1, P_SPATIAL), jnp.float32))],
        axis=0).astype(jnp.bfloat16)                                       # (2*ts, ts*36)

    # fused head RHS: lanes 0..1 fc2 weights (padded to 128), lanes 128..143 WeightNet W1.
    head_w = jnp.zeros((FEAT_SIZE, HEAD_LANES), jnp.float32)
    head_w = head_w.at[:, :NUM_CLASSES].set(params['fc2_w'].T)
    head_w = head_w.at[:, LANES:].set(params['wn_w1'])
    head_w = head_w.astype(jnp.bfloat16)

    # all tiny constants merged into one f32 slab (fewer DMA descriptors per call).
    # fc1 bias is folded into the effective fc2 bias: b_eff = fc2_b + fc1_b * sum_c fc2_w.
    head_b_eff = params['fc2_b'] + params['fc1_b'][0] * jnp.sum(params['fc2_w'], axis=1)
    consts = jnp.zeros((8, HEAD_LANES), jnp.float32)
    consts = consts.at[0, :FEAT_SIZE].set(params['conv_b'])                # conv bias
    consts = consts.at[1, :NUM_CLASSES].set(head_b_eff)                    # z-bias, logits half
    consts = consts.at[1, LANES:].set(params['wn_b1'])                     # z-bias, WeightNet half
    consts = consts.at[2, :HIDDEN_W].set(params['wn_w2'][:, 0])            # WeightNet layer-2 w
    consts = consts.at[3, 0].set(params['wn_b2'][0])                       # WeightNet layer-2 b
    consts = consts.at[4, NUM_CLASSES].set(1.0)                            # weight-lane one-hot

    pidx = build_patch_index()
    return {
        'conv_w': params['conv_w_flat'].astype(jnp.bfloat16),
        'sel': sel,
        'head_w': head_w,
        'consts': consts,
        'pidx_safe': jnp.asarray(np.where(pidx >= 0, pidx, 0), jnp.int32),
        'pidx_valid': jnp.asarray(pidx >= 0),
    }


# ----------------------------- pure-JAX f32 reference ------------------------
def reference_forward(params, x):
    b = x.shape[0]
    xs = jnp.concatenate([jnp.rot90(x, k=g, axes=(2, 3)) for g in range(GROUP_SIZE)], axis=0)
    xp = jnp.pad(xs, ((0, 0), (0, 0), (PAD, PAD), (PAD, PAD)))
    patch_list = []
    for c in range(IN_CH):
        for ky in range(KSIZE):
            for kx in range(KSIZE):
                patch_list.append(
                    xp[:, c, ky:ky + STRIDE * FMAP:STRIDE, kx:kx + STRIDE * FMAP:STRIDE])
    cols = jnp.stack(patch_list, axis=-1).reshape(-1, PATCH_K)            # rows (gb, oy, ox)
    feat = jnp.maximum(cols @ params['conv_w_flat'] + params['conv_b'], 0.0)
    gbn = GROUP_SIZE * b
    feat3 = feat.reshape(gbn, P_SPATIAL, FEAT_SIZE)
    x1 = jnp.einsum('bsc,s->bc', feat3, params['fc1_w']) + params['fc1_b']
    logits = x1 @ params['fc2_w'].T + params['fc2_b']
    pooled = feat3.sum(axis=1)
    h = jnp.maximum(pooled @ params['wn_w1'] + params['wn_b1'], 0.0)
    wraw = h @ params['wn_w2'] + params['wn_b2']
    wts = jax.nn.softmax(wraw.reshape(GROUP_SIZE, b), axis=0).reshape(gbn, 1)
    return logits, wts


if __name__ == "__main__":
    key = jax.random.PRNGKey(0)
    pkey, xkey = jax.random.split(key)
    params = init_params(pkey)

    BATCH = 4
    packed = pack_params(params, TILE_BATCH)
    x = jax.random.normal(xkey, (BATCH, IN_CH, SPATIAL_IN, SPATIAL_IN), jnp.float32)

    logits, weights = equi0cnn_forward(packed, x)
    jax.block_until_ready((logits, weights))

    assert logits.shape == (GROUP_SIZE * BATCH, NUM_CLASSES)
    assert weights.shape == (GROUP_SIZE * BATCH, 1)

    # weights are a softmax over the group dim -> each batch column sums to ~1
    # (tolerance covers the EUP approximate reciprocal).
    wsum = jnp.sum(weights.reshape(GROUP_SIZE, BATCH), axis=0)
    assert bool(jnp.all(jnp.abs(wsum - 1.0) < 1e-2))

    # pure-JAX f32 reference: validates the fused rot90+im2col gather, row ordering,
    # parameter packing/folding and the group softmax.  Tolerance covers bf16-at-the-MXU.
    ref_logits, ref_weights = reference_forward(params, x)
    assert bool(jnp.max(jnp.abs(logits - ref_logits)) < 5e-2)
    assert bool(jnp.max(jnp.abs(weights - ref_weights)) < 5e-2)

    print("KERNEL_OK")
</pallas_src>

<mosaic_0001>
module attributes {stable_mosaic.version = 11 : i64} {
  func.func @_equi0_fused_kernel(%arg0: i32, %arg1: memref<288x27xbf16, #tpu.memory_space<vmem>>, %arg2: memref<27x32xbf16, #tpu.memory_space<vmem>>, %arg3: memref<16x288xbf16, #tpu.memory_space<vmem>>, %arg4: memref<32x144xbf16, #tpu.memory_space<vmem>>, %arg5: memref<8x144xf32, #tpu.memory_space<vmem>>, %arg6: memref<8x128xf32, #tpu.memory_space<vmem>>) attributes {dimension_semantics = [#tpu.dimension_semantics<parallel>], iteration_bounds = array<i64: 2>, scalar_prefetch = 0 : i64, scratch_operands = 0 : i64, tpu.core_type = #tpu.core_type<tc>, window_params = [{transform_indices = @transform_0, window_bounds = array<i64: 288, 27>}, {pipeline_mode = #tpu.pipeline_mode<synchronous>, transform_indices = @transform_1, window_bounds = array<i64: 27, 32>}, {pipeline_mode = #tpu.pipeline_mode<synchronous>, transform_indices = @transform_2, window_bounds = array<i64: 16, 288>}, {pipeline_mode = #tpu.pipeline_mode<synchronous>, transform_indices = @transform_3, window_bounds = array<i64: 32, 144>}, {pipeline_mode = #tpu.pipeline_mode<synchronous>, transform_indices = @transform_4, window_bounds = array<i64: 8, 144>}, {transform_indices = @transform_5, window_bounds = array<i64: 8, 128>}]} {
    %c0 = arith.constant 0 : index
    %c0_0 = arith.constant 0 : index
    %0 = vector.load %arg5[%c0, %c0_0] : memref<8x144xf32, #tpu.memory_space<vmem>>, vector<1x32xf32>
    %c1 = arith.constant 1 : index
    %c0_1 = arith.constant 0 : index
    %1 = vector.load %arg5[%c1, %c0_1] : memref<8x144xf32, #tpu.memory_space<vmem>>, vector<1x144xf32>
    %c2 = arith.constant 2 : index
    %c0_2 = arith.constant 0 : index
    %2 = vector.load %arg5[%c2, %c0_2] : memref<8x144xf32, #tpu.memory_space<vmem>>, vector<1x16xf32>
    %c3 = arith.constant 3 : index
    %c0_3 = arith.constant 0 : index
    %3 = vector.load %arg5[%c3, %c0_3] : memref<8x144xf32, #tpu.memory_space<vmem>>, vector<1x1xf32>
    %c4 = arith.constant 4 : index
    %c0_4 = arith.constant 0 : index
    %4 = vector.load %arg5[%c4, %c0_4] : memref<8x144xf32, #tpu.memory_space<vmem>>, vector<1x128xf32>
    %c0_5 = arith.constant 0 : index
    %c0_6 = arith.constant 0 : index
    %5 = vector.load %arg1[%c0_5, %c0_6] : memref<288x27xbf16, #tpu.memory_space<vmem>>, vector<288x27xbf16>
    %c0_7 = arith.constant 0 : index
    %c0_8 = arith.constant 0 : index
    %6 = vector.load %arg2[%c0_7, %c0_8] : memref<27x32xbf16, #tpu.memory_space<vmem>>, vector<27x32xbf16>
    %cst = arith.constant dense<0.000000e+00> : vector<288x32xf32>
    %7 = tpu.matmul %5, %6, %cst {dimension_numbers = #tpu.dot_dimension_numbers<[1], [0], [0], [1], [0, 0, 1, 1], [], []>} : vector<288x27xbf16>, vector<27x32xbf16>, vector<288x32xf32> -> vector<288x32xf32>
    %8 = vector.broadcast %0 : vector<1x32xf32> to vector<288x32xf32>
    %9 = arith.addf %7, %8 : vector<288x32xf32>
    %cst_9 = arith.constant 0.000000e+00 : f32
    %10 = vector.broadcast %cst_9 : f32 to vector<288x32xf32>
    %11 = arith.maximumf %9, %10 : vector<288x32xf32>
    %c0_10 = arith.constant 0 : index
    %c0_11 = arith.constant 0 : index
    %12 = vector.load %arg3[%c0_10, %c0_11] : memref<16x288xbf16, #tpu.memory_space<vmem>>, vector<16x288xbf16>
    %13 = arith.truncf %11 : vector<288x32xf32> to vector<288x32xbf16>
    %cst_12 = arith.constant dense<0.000000e+00> : vector<16x32xf32>
    %14 = tpu.matmul %12, %13, %cst_12 {dimension_numbers = #tpu.dot_dimension_numbers<[1], [0], [0], [1], [0, 0, 1, 1], [], []>} : vector<16x288xbf16>, vector<288x32xbf16>, vector<16x32xf32> -> vector<16x32xf32>
    %15 = arith.truncf %14 : vector<16x32xf32> to vector<16x32xbf16>
    %c0_13 = arith.constant 0 : index
    %c0_14 = arith.constant 0 : index
    %16 = vector.load %arg4[%c0_13, %c0_14] : memref<32x144xbf16, #tpu.memory_space<vmem>>, vector<32x144xbf16>
    %cst_15 = arith.constant dense<0.000000e+00> : vector<16x144xf32>
    %17 = tpu.matmul %15, %16, %cst_15 {dimension_numbers = #tpu.dot_dimension_numbers<[1], [0], [0], [1], [0, 0, 1, 1], [], []>} : vector<16x32xbf16>, vector<32x144xbf16>, vector<16x144xf32> -> vector<16x144xf32>
    %18 = vector.broadcast %1 : vector<1x144xf32> to vector<16x144xf32>
    %19 = arith.addf %17, %18 : vector<16x144xf32>
    %20 = vector.extract_strided_slice %19 {offsets = [0, 0], sizes = [8, 128], strides = [1, 1]} : vector<16x144xf32> to vector<8x128xf32>
    %21 = vector.extract_strided_slice %19 {offsets = [8, 128], sizes = [8, 16], strides = [1, 1]} : vector<16x144xf32> to vector<8x16xf32>
    %cst_16 = arith.constant 0.000000e+00 : f32
    %22 = vector.broadcast %cst_16 : f32 to vector<8x16xf32>
    %23 = arith.maximumf %21, %22 : vector<8x16xf32>
    %24 = vector.broadcast %2 : vector<1x16xf32> to vector<8x16xf32>
    %25 = arith.mulf %23, %24 : vector<8x16xf32>
    %cst_17 = arith.constant dense<0.000000e+00> : vector<8xf32>
    %26 = vector.multi_reduction <add>, %25, %cst_17 [1] : vector<8x16xf32> to vector<8xf32>
    %27 = vector.shape_cast %26 : vector<8xf32> to vector<8x1xf32>
    %28 = vector.broadcast %3 : vector<1x1xf32> to vector<8x1xf32>
    %29 = arith.addf %27, %28 : vector<8x1xf32>
    %c2_i32 = arith.constant 2 : i32
    %30 = tpu.dynamic_rotate %29 by %c2_i32 dim 0 : vector<8x1xf32>, i32 -> vector<8x1xf32>
    %31 = arith.maximumf %29, %30 : vector<8x1xf32>
    %c4_i32 = arith.constant 4 : i32
    %32 = tpu.dynamic_rotate %31 by %c4_i32 dim 0 : vector<8x1xf32>, i32 -> vector<8x1xf32>
    %33 = arith.maximumf %31, %32 : vector<8x1xf32>
    %34 = arith.subf %29, %33 : vector<8x1xf32>
    %35 = math.exp %34 : vector<8x1xf32>
    %c2_i32_18 = arith.constant 2 : i32
    %36 = tpu.dynamic_rotate %35 by %c2_i32_18 dim 0 : vector<8x1xf32>, i32 -> vector<8x1xf32>
    %37 = arith.addf %35, %36 : vector<8x1xf32>
    %c4_i32_19 = arith.constant 4 : i32
    %38 = tpu.dynamic_rotate %37 by %c4_i32_19 dim 0 : vector<8x1xf32>, i32 -> vector<8x1xf32>
    %39 = arith.addf %37, %38 : vector<8x1xf32>
    %40 = tpu.reciprocal %39 {approx = true} : vector<8x1xf32> -> vector<8x1xf32>
    %41 = arith.mulf %35, %40 : vector<8x1xf32>
    %42 = vector.broadcast %41 : vector<8x1xf32> to vector<8x128xf32>
    %43 = vector.broadcast %4 : vector<1x128xf32> to vector<8x128xf32>
    %44 = arith.mulf %42, %43 : vector<8x128xf32>
    %45 = arith.addf %20, %44 : vector<8x128xf32>
    %c0_20 = arith.constant 0 : index
    %c0_21 = arith.constant 0 : index
    %46 = vector.load %arg6[%c0_20, %c0_21] : memref<8x128xf32, #tpu.memory_space<vmem>>, vector<8x128xf32>
    tpu.vector_store %arg6[%c0_20, %c0_21], %45 {strides = array<i32>} : memref<8x128xf32, #tpu.memory_space<vmem>>, vector<8x128xf32>,
    return
  }
  func.func @transform_0(%arg0: i32) -> (i32, i32) {
    %c0_i32 = arith.constant 0 : i32
    %c0_i32_0 = arith.constant 0 : i32
    return %arg0, %c0_i32 : i32, i32
  }
  func.func @transform_1(%arg0: i32) -> (i32, i32) {
    %c0_i32 = arith.constant 0 : i32
    %c0_i32_0 = arith.constant 0 : i32
    %c0_i32_1 = arith.constant 0 : i32
    return %c0_i32, %c0_i32_0 : i32, i32
  }
  func.func @transform_2(%arg0: i32) -> (i32, i32) {
    %c0_i32 = arith.constant 0 : i32
    %c0_i32_0 = arith.constant 0 : i32
    %c0_i32_1 = arith.constant 0 : i32
    return %c0_i32, %c0_i32_0 : i32, i32
  }
  func.func @transform_3(%arg0: i32) -> (i32, i32) {
    %c0_i32 = arith.constant 0 : i32
    %c0_i32_0 = arith.constant 0 : i32
    %c0_i32_1 = arith.constant 0 : i32
    return %c0_i32, %c0_i32_0 : i32, i32
  }
  func.func @transform_4(%arg0: i32) -> (i32, i32) {
    %c0_i32 = arith.constant 0 : i32
    %c0_i32_0 = arith.constant 0 : i32
    %c0_i32_1 = arith.constant 0 : i32
    return %c0_i32, %c0_i32_0 : i32, i32
  }
  func.func @transform_5(%arg0: i32) -> (i32, i32) {
    %c0_i32 = arith.constant 0 : i32
    %c0_i32_0 = arith.constant 0 : i32
    return %arg0, %c0_i32 : i32, i32
  }
}

</mosaic_0001>

<bundles_post_ra>
// kernel: equi0cnn_forward.1
= control target key start
LH: loop header
LB: loop body
LE: loop exit
PB: predicated region body
PF: predicated region fallthrough
CT: control target
= control target key end

     0   :  { %s1171_s18 = smov 0   ;;  %s1337_s0 = inlined_call_operand.vmem [shape: bf16[576,27], index: 0, kind: input, shape index: {}]   ;;  %s1338_s1 = inlined_call_operand.vmem [shape: bf16[27,32], index: 1, kind: input, shape index: {}]   ;;  %s1339_s2 = inlined_call_operand.vmem [shape: bf16[16,288], index: 2, kind: input, shape index: {}]   ;;  %s1340_s3 = inlined_call_operand.vmem [shape: bf16[32,144], index: 3, kind: input, shape index: {}]   ;;  %s1341_s4 = inlined_call_operand.vmem [shape: f32[8,144], index: 4, kind: input, shape index: {}]   ;;  %s1342_s5 = inlined_call_operand.vmem [shape: f32[16,128], index: 5, kind: output, shape index: {}]  }
   0x1 LB: > { %s1177_s19 = sadd.s32 4294967295, %s1135_s18   ;;  %p936_p0 = scmp.ge.s32.totalorder %s1135_s18, 1  ;;  %s1135_s18 = sphi %s1171_s18, %s15_s18  }
   0x2   : > { %p188_p1 = scmp.lt.s32.totalorder %s1135_s18, 3 }
   0x4   : > { %p189_p2 = pnand %p936_p0, %p188_p1 }
   0x5   : > { %v1095_v0 = vld [vmem:[%s1338_s1] sm:$0xff] (!%p189_p2)   ;;  %vm428_vm0 = vcmask (!%p189_p2), 1044480   ;;  %v1096_v1 = vld [vmem:[%s1338_s1 + $0x8] sm:$0x3f] (!%p189_p2)   ;;  %vm429_vm1 = vcmask (!%p189_p2), 1045504   ;;  %s215_s24 = smul.u32 (!%p189_p2), 36, %s1177_s19 }
   0x6   : > { %192 = sbr.rel (%p189_p2) target bundleno = 1072 (0x430), region = 40  ;;  %1034 = vmatprep.subr.bf16.mxu0 (!%p189_p2), %v1095_v0  ;;  %v1137_v2 = vmov (!%p189_p2), 65535   ;;  %vm373_vm2 = vcmask (!%p189_p2), 220160   ;;  %v1117_v24 = vld [vmem:[%s1339_s2 + $0x4] ss:$12 sps:$4 sm:$0xff] (!%p189_p2)   ;;  %vm1139_vm3 = vmmov (!%p189_p2), 0  }
   0x7   : > { %1035 = vmatpush3.bf16.msra.mxu0 (!%p189_p2), %v1095_v0  ;;  %v430_v3 = vsel (!%p189_p2), %vm428_vm0, 4294967295, %v1137_v2  ;;  %p216_p3 = scmp.lt.s32.totalorder (!%p189_p2), %s215_s24, 71  ;;  %721 = vmatprep.mubr.bf16.mxu1 (!%p189_p2), %v1117_v24  ;;  %v1235_v25 = vld [vmem:[%s1341_s4] ss:$0 sm:$0xff] (!%p189_p2)  ;;  %vm685_vm4 = vcmask (!%p189_p2), 261120   ;;  %vm853_vm5 = vcmask (!%p189_p2), 130048  }
   0x8   : > { %v431_v4 = vsel (!%p189_p2), %vm429_vm1, %v430_v3, 0  ;;  %p221_p4 = scmp.lt.s32.totalorder (!%p189_p2), %s1177_s19, 1 }
   0x9   : > { %v433_v5 = vand.u32 (!%p189_p2), %v1096_v1, %v431_v4 }
   0xb   : > { %1036 = vmatprep.subr.bf16.mxu0 (!%p189_p2), %v433_v5 }
   0xc   : > { %1037 = vmatpush3.bf16.msra.mxu0 (!%p189_p2), %v433_v5 }
   0xd   : > { %s1344_s24 = smov (!%p216_p3, %s215_s24), 71  ;;  %s1346_s19 = smov (!%p221_p4, %s1177_s19), 1 }
   0xe   : > { %s937_s25 = sshll.u32 %s1344_s24, 2  ;;  %s938_s30 = sshll.u32 %s1346_s19, 3 }
   0xf   : > { %s1191_s28 = scalar_lea.vmem %s1337_s0, %s937_s25  ;;  %s224_s8 = scalar_lea.vmem %s1342_s5, %s938_s30 }
  0x10   : > { %v1097_v6 = vld [vmem:[%s1191_s28] sm:$0xff]   ;;  %v1098_v7 = vld [vmem:[%s1191_s28 + $0x8] sm:$0xff]   ;;  %v1099_v8 = vld [vmem:[%s1191_s28 + $0x10] sm:$0xff]  }
  0x11   : > { %1038 = vmatprep.mubr.msk.bf16.mxu0 %vm373_vm2, %v1097_v6  ;;  %v1100_v9 = vld [vmem:[%s1191_s28 + $0x18] sm:$0xff]   ;;  %v1101_v10 = vld [vmem:[%s1191_s28 + $0x20] sm:$0xff]   ;;  %v1102_v11 = vld [vmem:[%s1191_s28 + $0x28] sm:$0xff]  }
  0x12   : > { %1039 = vmatmul.mubr.msk.bf16.vlgmr.msra.gmra.mrb[0].mxu0 %vm373_vm2, %v1098_v7  ;;  %v1103_v12 = vld [vmem:[%s1191_s28 + $0x30] sm:$0xff]   ;;  %v1104_v13 = vld [vmem:[%s1191_s28 + $0x38] sm:$0xff]   ;;  %v1105_v14 = vld [vmem:[%s1191_s28 + $0x40] sm:$0xff]  }
  0x13   : > { %1042 = vmatprep.mubr.msk.bf16.mxu0 %vm373_vm2, %v1099_v8  ;;  %v1106_v15 = vld [vmem:[%s1191_s28 + $0x48] sm:$0xff]   ;;  %v1107_v16 = vld [vmem:[%s1191_s28 + $0x50] sm:$0xff]   ;;  %v1108_v17 = vld [vmem:[%s1191_s28 + $0x58] sm:$0xff]  }
  0x14   : > { %v1109_v18 = vld [vmem:[%s1191_s28 + $0x60] sm:$0xff]   ;;  %v1110_v19 = vld [vmem:[%s1191_s28 + $0x68] sm:$0xff]   ;;  %v1111_v20 = vld [vmem:[%s1191_s28 + $0x70] sm:$0xff]  }
  0x15   : > { %v1112_v21 = vld [vmem:[%s1191_s28 + $0x78] sm:$0xff]   ;;  %v1113_v22 = vld [vmem:[%s1191_s28 + $0x80] sm:$0xff]   ;;  %v1114_v23 = vld [vmem:[%s1191_s28 + $0x88] sm:$0xff]  }
  0x1a   : > { %1043 = vmatmul.mubr.msk.bf16.gmra.mrb[4].mxu0 %vm373_vm2, %v1100_v9 }
  0x1b   : > { %1046 = vmatprep.mubr.msk.bf16.mxu0 %vm373_vm2, %v1101_v10 }
  0x22   : > { %1047 = vmatmul.mubr.msk.bf16.gmra.mrb[8].mxu0 %vm373_vm2, %v1102_v11 }
  0x23   : > { %1050 = vmatprep.mubr.msk.bf16.mxu0 %vm373_vm2, %v1103_v12 }
  0x2a   : > { %1051 = vmatmul.mubr.msk.bf16.gmra.mrb[12].mxu0 %vm373_vm2, %v1104_v13 }
  0x2b   : > { %1054 = vmatprep.mubr.msk.bf16.mxu0 %vm373_vm2, %v1105_v14 }
  0x32   : > { %1055 = vmatmul.mubr.msk.bf16.gmra.mrb[16].mxu0 %vm373_vm2, %v1106_v15 }
  0x33   : > { %1058 = vmatprep.mubr.msk.bf16.mxu0 %vm373_vm2, %v1107_v16 }
  0x3a   : > { %1059 = vmatmul.mubr.msk.bf16.gmra.mrb[20].mxu0 %vm373_vm2, %v1108_v17 }
  0x3b   : > { %1062 = vmatprep.mubr.msk.bf16.mxu0 %vm373_vm2, %v1109_v18 }
  0x42   : > { %1063 = vmatmul.mubr.msk.bf16.gmra.mrb[24].mxu0 %vm373_vm2, %v1110_v19 }
  0x43   : > { %1066 = vmatprep.mubr.msk.bf16.mxu0 %vm373_vm2, %v1111_v20 }
  0x4a   : > { %1067 = vmatmul.mubr.msk.bf16.gmra.mrb[28].mxu0 %vm373_vm2, %v1112_v21 }
  0x4b   : > { %1070 = vmatprep.mubr.msk.bf16.mxu0 %vm373_vm2, %v1113_v22 }
  0x52   : > { %1071 = vmatmul.mubr.msk.bf16.gmra.mrb[32].mxu0 %vm373_vm2, %v1114_v23 }
  0xe5   : > { %v1040_v26 = vpop.f32.mrb[0].mxu0 }
  0xe6   : > { %v478_v27 = vadd.f32 %v1040_v26, %v1235_v25  ;;  %v469_v28 = vpop.f32.mrb[1].mxu0 }
  0xe7   : > { %v470_v29 = vadd.f32 %v469_v28, %v1235_v25  ;;  %v1041_v30 = vpop.f32.mrb[2].mxu0 }
  0xe8   : > { %v481_v31 = vadd.f32 %v1041_v30, %v1235_v25  ;;  %v472_v32 = vpop.f32.mrb[3].mxu0  ;;  %v614_v34 = vmax.f32 %v478_v27, 0.0 }
  0xe9   : > { %v473_v33 = vadd.f32 %v472_v32, %v1235_v25  ;;  %v612_v36 = vmax.f32 %v470_v29, 0.0 }
  0xea   : > { %v615_v35 = vmax.f32 %v481_v31, 0.0 }
  0xeb   : > { %v613_v37 = vmax.f32 %v473_v33, 0.0 }
  0xec   : > { %v1241_v38 = vpack.c.bf16 %v615_v35, %v614_v34 }
  0xed   : > { %v1044_v39 = vpop.f32.mrb[4].mxu0  ;;  %v1243_v40 = vpack.c.bf16 %v613_v37, %v612_v36 }
  0xee   : > { %v494_v41 = vadd.f32 %v1044_v39, %v1235_v25  ;;  %v485_v42 = vpop.f32.mrb[5].mxu0 }
  0xef   : > { %v486_v43 = vadd.f32 %v485_v42, %v1235_v25  ;;  %v1045_v44 = vpop.f32.mrb[6].mxu0 }
  0xf0   : > { %v497_v45 = vadd.f32 %v1045_v44, %v1235_v25  ;;  %v488_v46 = vpop.f32.mrb[7].mxu0  ;;  %v618_v48 = vmax.f32 %v494_v41, 0.0 }
  0xf1   : > { %v489_v47 = vadd.f32 %v488_v46, %v1235_v25  ;;  %v616_v50 = vmax.f32 %v486_v43, 0.0 }
  0xf2   : > { %v619_v49 = vmax.f32 %v497_v45, 0.0 }
  0xf3   : > { %v617_v51 = vmax.f32 %v489_v47, 0.0 }
  0xf4   : > { %v1249_v52 = vpack.c.bf16 %v619_v49, %v618_v48 }
  0xf5   : > { %v1251_v53 = vpack.c.bf16 %v617_v51, %v616_v50  ;;  %v1048_v54 = vpop.f32.mrb[8].mxu0 }
  0xf6   : > { %v510_v55 = vadd.f32 %v1048_v54, %v1235_v25  ;;  %v501_v56 = vpop.f32.mrb[9].mxu0 }
  0xf7   : > { %v502_v57 = vadd.f32 %v501_v56, %v1235_v25  ;;  %v1049_v58 = vpop.f32.mrb[10].mxu0 }
  0xf8   : > { %v513_v59 = vadd.f32 %v1049_v58, %v1235_v25  ;;  %v504_v60 = vpop.f32.mrb[11].mxu0  ;;  %v622_v62 = vmax.f32 %v510_v55, 0.0 }
  0xf9   : > { %v505_v61 = vadd.f32 %v504_v60, %v1235_v25  ;;  %v620_v0 = vmax.f32 %v502_v57, 0.0 }
  0xfa   : > { %v623_v63 = vmax.f32 %v513_v59, 0.0 }
  0xfb   : > { %v621_v1 = vmax.f32 %v505_v61, 0.0 }
  0xfc   : > { %v1257_v2 = vpack.c.bf16 %v623_v63, %v622_v62 }
  0xfd   : > { %v1259_v3 = vpack.c.bf16 %v621_v1, %v620_v0  ;;  %v1052_v4 = vpop.f32.mrb[12].mxu0 }
  0xfe   : > { %v526_v5 = vadd.f32 %v1052_v4, %v1235_v25  ;;  %v517_v6 = vpop.f32.mrb[13].mxu0 }
  0xff   : > { %v518_v7 = vadd.f32 %v517_v6, %v1235_v25  ;;  %v1053_v8 = vpop.f32.mrb[14].mxu0 }
 0x100   : > { %v529_v9 = vadd.f32 %v1053_v8, %v1235_v25  ;;  %v520_v10 = vpop.f32.mrb[15].mxu0  ;;  %v626_v12 = vmax.f32 %v526_v5, 0.0 }
 0x101   : > { %v521_v11 = vadd.f32 %v520_v10, %v1235_v25  ;;  %v624_v14 = vmax.f32 %v518_v7, 0.0 }
 0x102   : > { %v627_v13 = vmax.f32 %v529_v9, 0.0 }
 0x103   : > { %v625_v15 = vmax.f32 %v521_v11, 0.0 }
 0x104   : > { %v1265_v16 = vpack.c.bf16 %v627_v13, %v626_v12 }
 0x105   : > { %v1267_v17 = vpack.c.bf16 %v625_v15, %v624_v14  ;;  %v1056_v18 = vpop.f32.mrb[16].mxu0 }
 0x106   : > { %v542_v19 = vadd.f32 %v1056_v18, %v1235_v25  ;;  %v533_v20 = vpop.f32.mrb[17].mxu0 }
 0x107   : > { %v534_v21 = vadd.f32 %v533_v20, %v1235_v25  ;;  %v1057_v22 = vpop.f32.mrb[18].mxu0 }
 0x108   : > { %v545_v23 = vadd.f32 %v1057_v22, %v1235_v25  ;;  %v536_v24 = vpop.f32.mrb[19].mxu0  ;;  %v630_v27 = vmax.f32 %v542_v19, 0.0 }
 0x109   : > { %v537_v26 = vadd.f32 %v536_v24, %v1235_v25  ;;  %v628_v29 = vmax.f32 %v534_v21, 0.0 }
 0x10a   : > { %v631_v28 = vmax.f32 %v545_v23, 0.0 }
 0x10b   : > { %v629_v30 = vmax.f32 %v537_v26, 0.0  ;;  %v1115_v26 = vld [vmem:[%s1339_s2] ss:$12 sps:$4 sm:$0xff]  }
 0x10c   : > { %v661_v31 = vpack.c.bf16 %v631_v28, %v630_v27 }
 0x10d   : > { %v1060_v32 = vpop.f32.mrb[20].mxu0  ;;  %v660_v33 = vpack.c.bf16 %v629_v30, %v628_v29  ;;  %v1138_v29 = vmov 0.0   ;;  %v1124_v30 = vld [vmem:[%s1340_s3 + $0x14] ss:$8 sps:$4 sm:$0xff]  }
 0x10e   : > { %v558_v34 = vadd.f32 %v1060_v32, %v1235_v25  ;;  %v549_v35 = vpop.f32.mrb[21].mxu0  ;;  %v1140_v32 = vmov 0  }
 0x10f   : > { %v550_v36 = vadd.f32 %v549_v35, %v1235_v25  ;;  %v1061_v37 = vpop.f32.mrb[22].mxu0  ;;  %1009 = vmatprep.subr.bf16.mxu1 %v660_v33  ;;  %1094 = vset.pattern.permute.xlu0 %v1140_v32 }
 0x110   : > { %v561_v39 = vadd.f32 %v1061_v37, %v1235_v25  ;;  %v552_v41 = vpop.f32.mrb[23].mxu0  ;;  %1010 = vmatpush3.bf16.msra.mxu1 %v1243_v40  ;;  %v634_v43 = vmax.f32 %v558_v34, 0.0 }
 0x111   : > { %v553_v42 = vadd.f32 %v552_v41, %v1235_v25  ;;  %1011 = vmatprep.subr.bf16.mxu1 %v661_v31  ;;  %v632_v45 = vmax.f32 %v550_v36, 0.0  ;;  %v1122_v31 = vld [vmem:[%s1340_s3 + $0x10] ss:$8 sps:$4 sm:$0xff]  }
 0x112   : > { %v635_v44 = vmax.f32 %v561_v39, 0.0 }
 0x113   : > { %v633_v46 = vmax.f32 %v553_v42, 0.0 }
 0x114   : > { %v663_v47 = vpack.c.bf16 %v635_v44, %v634_v43  ;;  %1012 = vmatpush3.bf16.msra.mxu1 %v1241_v38 }
 0x115   : > { %v662_v48 = vpack.c.bf16 %v633_v46, %v632_v45  ;;  %v1064_v49 = vpop.f32.mrb[24].mxu0 }
 0x116   : > { %v574_v50 = vadd.f32 %v1064_v49, %v1235_v25  ;;  %v565_v51 = vpop.f32.mrb[25].mxu0 }
 0x117   : > { %v566_v54 = vadd.f32 %v565_v51, %v1235_v25  ;;  %v1065_v55 = vpop.f32.mrb[26].mxu0  ;;  %1013 = vmatprep.subr.bf16.mxu1 %v662_v48  ;;  %v777_v48 = vlaneseq  ;;  %v939_v51 = vld [vmem:[%s1341_s4 + $0x1] ss:$8 sm:$0x3] }
 0x118   : > { %v577_v40 = vadd.f32 %v1065_v55, %v1235_v25  ;;  %v568_v56 = vpop.f32.mrb[27].mxu0  ;;  %1014 = vmatpush3.bf16.msra.mxu1 %v1251_v53  ;;  %v638_v58 = vmax.f32 %v574_v50, 0.0 }
 0x119   : > { %v569_v57 = vadd.f32 %v568_v56, %v1235_v25  ;;  %1015 = vmatprep.subr.bf16.mxu1 %v663_v47  ;;  %v636_v38 = vmax.f32 %v566_v54, 0.0  ;;  %v778_v49 = vshrl.u32 %v777_v48, 7 }
 0x11a   : > { %v639_v59 = vmax.f32 %v577_v40, 0.0 }
 0x11b   : > { %v637_v60 = vmax.f32 %v569_v57, 0.0  ;;  %v783_v50 = vsub.s32 1, %v778_v49 }
 0x11c   : > { %v665_v61 = vpack.c.bf16 %v639_v59, %v638_v58  ;;  %1016 = vmatpush3.bf16.msra.mxu1 %v1249_v52  ;;  %v229_v59 = vld [vmem:[%s1341_s4 + $0x2] ss:$0 sm:$0xff] }
 0x11d   : > { %v664_v62 = vpack.c.bf16 %v637_v60, %v636_v38  ;;  %v1068_v63 = vpop.f32.mrb[28].mxu0  ;;  %v784_v55 = vrot.slane %v939_v51, %v783_v50 }
 0x11e   : > { %v590_v0 = vadd.f32 %v1068_v63, %v1235_v25  ;;  %v581_v1 = vpop.f32.mrb[29].mxu0 }
 0x11f   : > { %v582_v4 = vadd.f32 %v581_v1, %v1235_v25  ;;  %v1069_v5 = vpop.f32.mrb[30].mxu0  ;;  %1017 = vmatprep.subr.bf16.mxu1 %v664_v62  ;;  %v230_v62 = vld [vmem:[%s1341_s4 + $0x3] ss:$0 sm:$0xff] }
 0x120   : > { %v593_v53 = vadd.f32 %v1069_v5, %v1235_v25  ;;  %v584_v6 = vpop.f32.mrb[31].mxu0  ;;  %1018 = vmatpush3.bf16.msra.mxu1 %v1259_v3  ;;  %v642_v8 = vmax.f32 %v590_v0, 0.0 }
 0x121   : > { %v585_v7 = vadd.f32 %v584_v6, %v1235_v25  ;;  %1019 = vmatprep.subr.bf16.mxu1 %v665_v61  ;;  %v640_v52 = vmax.f32 %v582_v4, 0.0 }
 0x122   : > { %v643_v9 = vmax.f32 %v593_v53, 0.0 }
 0x123   : > { %v641_v10 = vmax.f32 %v585_v7, 0.0 }
 0x124   : > { %v667_v11 = vpack.c.bf16 %v643_v9, %v642_v8  ;;  %1020 = vmatpush3.bf16.msra.mxu1 %v1257_v2 }
 0x125   : > { %v666_v12 = vpack.c.bf16 %v641_v10, %v640_v52  ;;  %v1072_v13 = vpop.f32.mrb[32].mxu0 }
 0x126   : > { %v606_v14 = vadd.f32 %v1072_v13, %v1235_v25  ;;  %v597_v15 = vpop.f32.mrb[33].mxu0 }
 0x127   : > { %v598_v18 = vadd.f32 %v597_v15, %v1235_v25  ;;  %v1073_v19 = vpop.f32.mrb[34].mxu0  ;;  %1021 = vmatprep.subr.bf16.mxu1 %v666_v12 }
 0x128   : > { %v646_v3 = vmax.f32 %v606_v14, 0.0  ;;  %v609_v20 = vadd.f32 %v1073_v19, %v1235_v25  ;;  %v600_v21 = vpop.f32.mrb[35].mxu0  ;;  %1022 = vmatpush3.bf16.msra.mxu1 %v1267_v17  ;;  %v1121_v17 = vld [vmem:[%s1340_s3 + $0x4] ss:$8 sps:$4 sm:$0xff]   ;;  %v779_v14 = vsub.s32 0, %v778_v49 }
 0x129   : > { %v601_v22 = vadd.f32 %v600_v21, %v1235_v25  ;;  %1023 = vmatprep.subr.bf16.mxu1 %v667_v11  ;;  %v644_v2 = vmax.f32 %v598_v18, 0.0  ;;  %v1118_v25 = vld [vmem:[%s1339_s2 + $0x8] ss:$12 sps:$4 sm:$0xff]   ;;  %v231_v18 = vld [vmem:[%s1341_s4 + $0x4] ss:$0 sm:$0xff] }
 0x12a   : > { %v647_v23 = vmax.f32 %v609_v20, 0.0  ;;  %v780_v15 = vrot.slane %v939_v51, %v779_v14 }
 0x12b   : > { %v645_v24 = vmax.f32 %v601_v22, 0.0 }
 0x12c   : > { %v669_v27 = vpack.c.bf16 %v647_v23, %v646_v3  ;;  %1024 = vmatpush3.bf16.msra.mxu1 %v1265_v16  ;;  %v1119_v16 = vld [vmem:[%s1340_s3] ss:$8 sps:$4 sm:$0xff]  }
 0x12d   : > { %v668_v28 = vpack.c.bf16 %v645_v24, %v644_v2  ;;  %1074 = vmatprep.subr.bf16.mxu1 %v1138_v29 }
 0x12f   : > { %722 = vmatmul.mubr.bf16.vlgmr.msra.gmra.mrb[0].mxu1 %v1115_v26 }
 0x130   : > { %1075 = vmatpush3.bf16.msra.mxu1 %v668_v28  ;;  %1078 = vmatprep.mubr.msk.bf16.mxu1 %vm1139_vm3, %v1138_v29 }
 0x131   : > { %1076 = vmatprep.subr.bf16.mxu1 %v1138_v29 }
 0x134   : > { %1077 = vmatpush3.bf16.msra.mxu1 %v669_v27 }
 0x135   : > { %810 = vmatprep.subr.bf16.mxu1 %v1121_v17 }
 0x137   : > { %1079 = vmatmul.mubr.msk.bf16.vlgmr.msra.gmra.mrb[4].mxu1 %vm685_vm4, %v1118_v25 }
 0x138   : > { %811 = vmatpush1.bf16.msra.mxu1 %v1119_v16  ;;  %842 = vmatprep.mubr.bf16.mxu1 %v1140_v32 }
 0x139   : > { %812 = vmatprep.subr.bf16.mxu1 %v1124_v30 }
 0x13c   : > { %813 = vmatpush1.bf16.msra.mxu1 %v1122_v31 }
 0x202   : > { %v1025_v33 = vpop.f32.mrb[0].mxu1 }
 0x203   : > { %v1026_v34 = vpop.f32.mrb[1].mxu1 }
 0x204   : > { %v1027_v35 = vadd.f32 %v1026_v34, %v1025_v33  ;;  %v1028_v36 = vpop.f32.mrb[2].mxu1 }
 0x205   : > { %v1029_v37 = vpop.f32.mrb[3].mxu1 }
 0x206   : > { %v1030_v39 = vadd.f32 %v1029_v37, %v1028_v36 }
 0x20a   : > { %v764_v41 = vpop.f32.mrb[4].mxu1 }
 0x20b   : > { %v765_v42 = vadd.f32 %v1027_v35, %v764_v41  ;;  %v1080_v43 = vpop.f32.mrb[5].mxu1 }
 0x20c   : > { %v767_v44 = vpop.f32.mrb[6].mxu1 }
 0x20d   : > { %v768_v45 = vadd.f32 %v1030_v39, %v767_v44  ;;  %v1081_v46 = vpop.f32.mrb[7].mxu1 }
 0x20f   : > { %v771_v47 = vpack.c.bf16 %v768_v45, %v765_v42 }
 0x211   : > { %986 = vmatmul.mubr.msk.bf16.vlgmr.msra.gmra.mrb[8].mxu1 %vm685_vm4, %v771_v47 }
 0x2e4   : > { %v844_v54 = vpop.f32.mrb[8].mxu1 }
 0x2e5   : > { %v846_v40 = vpop.f32.mrb[9].mxu1  ;;  %v845_v3 = vadd.f32 %v844_v54, %v780_v15 }
 0x2e6   : > { %v847_v56 = vpop.f32.mrb[10].mxu1 }
 0x2e7   : > { %v848_v57 = vpop.f32.mrb[11].mxu1 }
 0x2e8   : > { %v849_v58 = vadd.f32 %v848_v57, %v784_v55 }
 0x2ea   : > { %v851_v38 = vmax.f32 %v849_v58, 0.0 }
 0x2ec   : > { %v852_v60 = vmul.f32 %v851_v38, %v229_v59 }
 0x2ee   : > { %v854_v61 = vsel %vm853_vm5, %v852_v60, 0.0 }
 0x2ef   : > { %855 = vadd.xlane.f32.xlu0 %v854_v61 }
 0x37c   : > { %v856_v63 = vpop.xlane.xlu0 %855 }
 0x37d   : > { %v857_v0 = vadd.f32 %v856_v63, %v230_v62 }
 0x37f   : > { %v858_v1 = vrot.slane %v857_v0, 6 }
 0x381   : > { %v859_v4 = vmax.f32 %v857_v0, %v858_v1 }
 0x383   : > { %v860_v5 = vrot.slane %v859_v4, 4 }
 0x385   : > { %v861_v53 = vmax.f32 %v859_v4, %v860_v5 }
 0x387   : > { %v862_v6 = vsub.f32 %v857_v0, %v861_v53 }
 0x389   : > { %v863_v7 = vmul.f32 1.442695, %v862_v6 }
 0x38b   : > { %1125 = vpow2.f32 %v863_v7 }
 0x395   : > { %v1126_v8 = vpop.eup %1125 }
 0x396   : > { %v865_v9 = vrot.slane %v1126_v8, 6 }
 0x398   : > { %v866_v52 = vadd.f32 %v1126_v8, %v865_v9 }
 0x39a   : > { %v867_v10 = vrot.slane %v866_v52, 4 }
 0x39c   : > { %v868_v11 = vadd.f32 %v867_v10, %v866_v52 }
 0x39e   : > { %1127 = vrcp.f32 %v868_v11 }
 0x3a8   : > { %v1128_v12 = vpop.eup %1127 }
 0x3a9   : > { %v870_v13 = vmul.f32 %v1128_v12, %v1126_v8 }
 0x3ab   : > { %873 = vperm.xlu0 %1094, %v870_v13  }
 0x42a   : > { %v874_v19 = vpop.permute.xlu0 %873 }
 0x42b   : > { %v876_v20 = vmul.f32 %v874_v19, %v231_v18 }
 0x42d   : > { %v877_v21 = vadd.f32 %v876_v20, %v845_v3 }
 0x42f   : > { %878 = vst [vmem:[%s224_s8] sm:$0xff] %v877_v21 }
 0x430 PF: > { %s15_s18 = sadd.s32 1, %s1135_s18  }
 0x431   : > { %p12_p5 = scmp.ge.s32.totalorder %s15_s18, 4  }
 0x433   :  { %14 = sbr.rel (!%p12_p5) target bundleno = 1 (0x1), region = 71 }

</bundles_post_ra>
